<compile_context>
chip_gen: v6e
topology: v6e:2x2x1
jax: 0.10.0
libtpu: 0.0.40
codegen_flags: <defaults>
</compile_context>

<pallas_src>
import functools

import jax
import jax.numpy as jnp
from jax import lax
from jax.experimental import pallas as pl
from jax.experimental.pallas import tpu as pltpu


def _sublane(itemsize):
    # Sublane packing granularity: f32 -> 8, bf16 -> 16, int8/fp8 -> 32.
    return 8 if itemsize >= 4 else (16 if itemsize == 2 else 32)


def _vmem_params():
    """(double-buffered input-block budget, scoped-vmem-limit cap) per chip."""
    phys = 64 << 20  # conservative default: assume v7x-sized VMEM (64 MiB/TC)
    try:
        info = pltpu.get_tpu_info()
        cap = getattr(info, "vmem_capacity_bytes", None)
        if cap:
            phys = int(cap)
    except Exception:
        pass
    if phys >= (100 << 20):          # v5e / v6e: 128 MiB physical VMEM
        return 44 << 20, 96 << 20
    return 26 << 20, 52 << 20        # v7x-like: 64 MiB physical, keep headroom


def _agg_kernel(*refs, n_layers, n_seq_tiles, seq_len, seq_tile, scale):
    """Sum L layer tiles over sequence into a (TB, H) output.

    refs = (x_ref_0, ..., x_ref_{L-1}, o_ref[, acc_ref])
      x_ref_i : (TB, TS, H) tile of layer i
      o_ref   : (TB, H) output block (same block across the seq-tile axis)
      acc_ref : (TB, 8, H) f32 scratch (only when n_seq_tiles > 1)
    """
    x_refs = refs[:n_layers]
    o_ref = refs[n_layers]

    # 1) Elementwise sum of all layer tiles in f32 (pure VALU, no XLU).
    tile = x_refs[0][...].astype(jnp.float32)
    for x_ref in x_refs[1:]:
        tile = tile + x_ref[...].astype(jnp.float32)
    tb, ts, h = tile.shape

    def _finish(x):
        if scale != 1.0:
            x = x * scale
        return x.astype(o_ref.dtype)

    if n_seq_tiles == 1:
        # Whole sequence in one tile: reduce and write the output directly
        # (no scratch accumulator, no reduction grid axis, no RMW).
        if ts % 8 == 0 and ts > 8:
            part = jnp.sum(tile.reshape(tb, ts // 8, 8, h), axis=1)  # VALU
            out = jnp.sum(part, axis=1)                              # one 8->1 XLU reduce
        else:
            out = jnp.sum(tile, axis=1)
        o_ref[...] = _finish(out)
        return

    acc_ref = refs[n_layers + 1]     # (TB, 8, H) f32
    s = pl.program_id(1)

    @pl.when(s == 0)
    def _():
        acc_ref[...] = jnp.zeros_like(acc_ref)

    # 2) Mask out-of-bounds rows of the (possibly partial) last sequence tile.
    if seq_len % seq_tile != 0:
        row = lax.broadcasted_iota(jnp.int32, tile.shape, 1)
        tile = jnp.where(row < (seq_len - s * seq_tile), tile, 0.0)

    # 3) Partial reduce with vreg-wise VALU adds only: (TB,TS,H) -> (TB,8,H).
    #    (TS is always a multiple of 8 on this path.)
    acc_ref[...] += jnp.sum(tile.reshape(tb, ts // 8, 8, h), axis=1)

    @pl.when(s == n_seq_tiles - 1)
    def _():
        # Single cross-sublane 8->1 reduce, once per output block.
        o_ref[...] = _finish(jnp.sum(acc_ref[...], axis=1))


def _make_in_spec(block_shape, index_map, n_buffers):
    if n_buffers > 2:
        try:
            return pl.BlockSpec(block_shape, index_map,
                                pipeline_mode=pl.Buffered(n_buffers))
        except TypeError:
            # pipeline_mode not available in this jax version -> default depth.
            pass
    return pl.BlockSpec(block_shape, index_map)


def _reduce_layers(layers, *, mean_over_layers, mean_over_seq):
    """layers: list of (B, S, H) arrays -> (B, H) via sum/mean over L and S."""
    layers = [jnp.asarray(x) for x in layers]
    L = len(layers)
    B, S, H = layers[0].shape
    dtype = layers[0].dtype
    itemsize = jnp.dtype(dtype).itemsize
    sub = _sublane(itemsize)

    budget, limit_cap = _vmem_params()

    # Batch tile: dtype-aware sublane alignment keeps the (TB, H) output block
    # dense (unmasked stores) and maximizes nb so the "parallel" batch axis
    # can shard across v7x's two TensorCores.
    TB = sub if B % sub == 0 else B

    # Sequence tile: as large as the double-buffered input budget allows,
    # with TS == S (single tile, no reduction axis) whenever it fits.
    row_bytes = TB * H * itemsize
    max_rows = budget // max(1, 2 * L * row_bytes)
    if max_rows >= S:
        TS, ns = S, 1
    else:
        TS = max(sub, (max_rows // sub) * sub)
        ns = (S + TS - 1) // TS      # cdiv grid; last tile masked in-kernel

    # 3-deep input pipelining when tiles are small and numerous (DMA-latency
    # exposure, e.g. mean_all with many layers) and VMEM margin clearly allows.
    block_bytes = TB * TS * H * itemsize
    fixed_bytes = 2 * TB * H * itemsize + (TB * 8 * H * 4 if ns > 1 else 0)
    n_buffers = 2
    if ns >= 4 and (3 * L * block_bytes + fixed_bytes) * 5 // 4 <= limit_cap - (8 << 20):
        n_buffers = 3

    needed = n_buffers * L * block_bytes + fixed_bytes
    if needed > limit_cap:
        raise ValueError(
            "AggregatorForBert Pallas kernel does not fit VMEM even at the "
            f"minimum tile: needs {needed} bytes, limit {limit_cap} bytes "
            f"(B={B}, S={S}, H={H}, L={L}, dtype={dtype}).")
    vmem_limit = int(min(max(needed * 5 // 4, 32 << 20), limit_cap))

    scale = 1.0
    if mean_over_layers:
        scale /= float(L)
    if mean_over_seq:
        scale /= float(S)

    kernel = functools.partial(
        _agg_kernel, n_layers=L, n_seq_tiles=ns, seq_len=S, seq_tile=TS,
        scale=scale)

    total_in_elems = L * B * S * H
    cost = pl.CostEstimate(
        flops=total_in_elems,
        transcendentals=0,
        bytes_accessed=total_in_elems * itemsize + B * H * itemsize)

    if ns == 1:
        grid = (B // TB,)
        in_specs = [pl.BlockSpec((TB, S, H), lambda b: (b, 0, 0))
                    for _ in range(L)]
        out_specs = pl.BlockSpec((TB, H), lambda b: (b, 0))
        scratch_shapes = []
        semantics = ("parallel",)
    else:
        grid = (B // TB, ns)
        in_specs = [_make_in_spec((TB, TS, H), lambda b, s: (b, s, 0), n_buffers)
                    for _ in range(L)]
        out_specs = pl.BlockSpec((TB, H), lambda b, s: (b, 0))
        scratch_shapes = [pltpu.VMEM((TB, 8, H), jnp.float32)]
        semantics = ("parallel", "arbitrary")

    return pl.pallas_call(
        kernel,
        out_shape=jax.ShapeDtypeStruct((B, H), dtype),
        grid_spec=pltpu.PrefetchScalarGridSpec(
            num_scalar_prefetch=0,
            grid=grid,
            in_specs=in_specs,
            out_specs=out_specs,
            scratch_shapes=scratch_shapes,
        ),
        compiler_params=pltpu.CompilerParams(
            dimension_semantics=semantics,
            vmem_limit_bytes=vmem_limit,
        ),
        cost_estimate=cost,
    )(*layers)


class AggregatorForBert:
    """JAX/Pallas port of NewsSentiment AggregatorForBert (no parameters)."""

    def __init__(self, spc_lm_representation: str):
        self.spc_lm_representation = spc_lm_representation

    def __call__(self, last_hidden_state, pooler_output, all_hidden_states):
        mode = self.spc_lm_representation
        if mode == 'pooler_output':
            # Pure pass-through; no reduction/compute to push into a kernel.
            return pooler_output
        elif mode == 'mean_last':
            return _reduce_layers([last_hidden_state],
                                  mean_over_layers=False, mean_over_seq=True)
        elif mode == 'mean_last_four':
            return _reduce_layers(list(all_hidden_states[-4:]),
                                  mean_over_layers=True, mean_over_seq=True)
        elif mode == 'mean_last_two':
            return _reduce_layers(list(all_hidden_states[-2:]),
                                  mean_over_layers=True, mean_over_seq=True)
        elif mode == 'mean_all':
            return _reduce_layers(list(all_hidden_states),
                                  mean_over_layers=True, mean_over_seq=True)
        elif mode == 'sum_last':
            return _reduce_layers([last_hidden_state],
                                  mean_over_layers=False, mean_over_seq=False)
        elif mode == 'sum_last_four':
            return _reduce_layers(list(all_hidden_states[-4:]),
                                  mean_over_layers=False, mean_over_seq=False)
        elif mode == 'sum_last_two':
            return _reduce_layers(list(all_hidden_states[-2:]),
                                  mean_over_layers=False, mean_over_seq=False)
        elif mode == 'sum_all':
            return _reduce_layers(list(all_hidden_states),
                                  mean_over_layers=False, mean_over_seq=False)
        else:
            raise ValueError(f"unknown spc_lm_representation: {mode}")


def _reference(mode, last_hidden_state, pooler_output, all_hidden_states):
    """Plain-JAX reference mirroring the PyTorch forward."""
    if mode == 'pooler_output':
        return pooler_output
    if mode == 'mean_last':
        return last_hidden_state.mean(axis=1)
    if mode == 'mean_last_four':
        return jnp.stack(all_hidden_states[-4:]).mean(axis=0).mean(axis=1)
    if mode == 'mean_last_two':
        return jnp.stack(all_hidden_states[-2:]).mean(axis=0).mean(axis=1)
    if mode == 'mean_all':
        return jnp.stack(all_hidden_states).mean(axis=0).mean(axis=1)
    if mode == 'sum_last':
        return last_hidden_state.sum(axis=1)
    if mode == 'sum_last_four':
        return jnp.stack(all_hidden_states[-4:]).sum(axis=0).sum(axis=1)
    if mode == 'sum_last_two':
        return jnp.stack(all_hidden_states[-2:]).sum(axis=0).sum(axis=1)
    if mode == 'sum_all':
        return jnp.stack(all_hidden_states).sum(axis=0).sum(axis=1)
    raise ValueError(mode)


def _run_checks(B, S, H, L, modes, atol, rtol, seed):
    key = jax.random.PRNGKey(seed)
    keys = jax.random.split(key, L + 1)
    all_hidden_states = tuple(
        jax.random.normal(keys[i], (B, S, H), dtype=jnp.float32)
        for i in range(L)
    )
    last_hidden_state = all_hidden_states[-1]
    pooler_output = jax.random.normal(keys[L], (B, H), dtype=jnp.float32)

    for mode in modes:
        agg = AggregatorForBert(mode)
        out = agg(last_hidden_state, pooler_output, all_hidden_states)
        out = jax.block_until_ready(out)
        ref = _reference(mode, last_hidden_state, pooler_output,
                         all_hidden_states)
        assert out.shape == ref.shape, (mode, out.shape, ref.shape)
        assert jnp.allclose(out, ref, atol=atol, rtol=rtol), mode


if __name__ == "__main__":
    # Small BERT-like shapes: batch=2, seq=8, hidden=32, 5 hidden-state layers
    # (embedding output + 4 encoder layers). Single-tile fast path.
    all_modes = ['pooler_output', 'mean_last', 'mean_last_four',
                 'mean_last_two', 'mean_all', 'sum_last', 'sum_last_four',
                 'sum_last_two', 'sum_all']
    _run_checks(B=2, S=8, H=32, L=5, modes=all_modes,
                atol=1e-5, rtol=1e-5, seed=0)

    # Non-multiple-of-8 sequence length (full-extent single-tile block).
    _run_checks(B=4, S=100, H=128, L=3,
                modes=['mean_last_two', 'sum_all'],
                atol=1e-5, rtol=1e-5, seed=2)

    # Larger shapes that exercise the tiled / pipelined path: multiple batch
    # tiles (parallel axis), multiple sequence (reduction) tiles with a
    # masked partial last tile, and the (TB,8,H) VALU accumulator.
    _run_checks(B=16, S=1024, H=256, L=5,
                modes=['mean_last', 'sum_last_four', 'mean_all'],
                atol=1e-4, rtol=1e-4, seed=1)

    print("KERNEL_OK")
</pallas_src>

<mosaic_0001>
module attributes {stable_mosaic.version = 11 : i64} {
  func.func @_agg_kernel(%arg0: i32, %arg1: memref<2x8x32xf32, #tpu.memory_space<vmem>>, %arg2: memref<2x32xf32, #tpu.memory_space<vmem>>) attributes {dimension_semantics = [#tpu.dimension_semantics<parallel>], iteration_bounds = array<i64: 1>, scalar_prefetch = 0 : i64, scratch_operands = 0 : i64, tpu.core_type = #tpu.core_type<tc>, window_params = [{transform_indices = @transform_0, window_bounds = array<i64: 2, 8, 32>}, {transform_indices = @transform_1, window_bounds = array<i64: 2, 32>}]} {
    %c0 = arith.constant 0 : index
    %c0_0 = arith.constant 0 : index
    %c0_1 = arith.constant 0 : index
    %0 = vector.load %arg1[%c0, %c0_0, %c0_1] : memref<2x8x32xf32, #tpu.memory_space<vmem>>, vector<2x8x32xf32>
    %cst = arith.constant dense<0.000000e+00> : vector<2x32xf32>
    %1 = vector.multi_reduction <add>, %0, %cst [1] : vector<2x8x32xf32> to vector<2x32xf32>
    %cst_2 = arith.constant 1.250000e-01 : f32
    %2 = vector.broadcast %cst_2 : f32 to vector<2x32xf32>
    %3 = arith.mulf %1, %2 : vector<2x32xf32>
    %c0_3 = arith.constant 0 : index
    %c0_4 = arith.constant 0 : index
    %4 = vector.load %arg2[%c0_3, %c0_4] : memref<2x32xf32, #tpu.memory_space<vmem>>, vector<2x32xf32>
    tpu.vector_store %arg2[%c0_3, %c0_4], %3 {strides = array<i32>} : memref<2x32xf32, #tpu.memory_space<vmem>>, vector<2x32xf32>,
    return
  }
  func.func @transform_0(%arg0: i32) -> (i32, i32, i32) {
    %c0_i32 = arith.constant 0 : i32
    %c0_i32_0 = arith.constant 0 : i32
    %c0_i32_1 = arith.constant 0 : i32
    return %arg0, %c0_i32, %c0_i32_0 : i32, i32, i32
  }
  func.func @transform_1(%arg0: i32) -> (i32, i32) {
    %c0_i32 = arith.constant 0 : i32
    %c0_i32_0 = arith.constant 0 : i32
    return %arg0, %c0_i32 : i32, i32
  }
}

</mosaic_0001>

<bundles_post_ra>
// kernel: tpu_custom_call.1
= control target key start
LH: loop header
LB: loop body
LE: loop exit
PB: predicated region body
PF: predicated region fallthrough
CT: control target
= control target key end

     0   :  { %6 = vsyncpa [#allocation3], 0  ;;  %s132_s0 = inlined_call_operand.hbm [shape: f32[2,8,32], index: 0, kind: input, shape index: {}]   ;;  %s133_s1 = inlined_call_operand.hbm [shape: f32[2,32], index: 1, kind: output, shape index: {}]  }
   0x1   :  { %7 = vsyncpa [#allocation4], 0  ;;  %s112_s6 = smov [#allocation2]  }
   0x2   :  { %s13_s7 = sshll.u32 %s112_s6, 4  ;;  %s14_s7 = int_to_ptr.vmem [resolvable:$true] %s13_s7 }
   0x3   :  { %s76_s8 = scalar_lea.vmem %s14_s7, 256  ;;  %p81_p1 = scmp.lt.s32.totalorder %s14_s7, %s14_s7 }
   0x4   :  { %p77_p0 = scmp.ne.s32.totalorder %s14_s7, %s76_s8  ;;  %p82_p2 = scmp.lt.s32.totalorder %s76_s8, %s76_s8 }
   0x6   :  { %p83_p3 = por %p82_p2, %p81_p1 }
   0x8   :  { %p84_p4 = pnand %p83_p3, %p77_p0 }
   0xa   :  { %87 = shalt.err (!%p84_p4)
}
   0xb   :  { %s113_s9 = smov 128   ;;  %s114_s10 = smov 8  }
   0xc   :  { %19 = dma.hbm_to_vmem [thread:$0]  %s132_s0, 256, %s14_s7, [#allocation3], %s113_s9, %s113_s9, %s114_s10  }
   0xd   :  { %108 = dma.done.wait [#allocation3], 256  }
   0xe   :  { %109 = vsyncadd [#allocation3], 4294967040  ;;  %vm25_vm0 = vcmask 261120   ;;  %v23_v0 = vld [vmem:[#allocation2] sm:$0xff]  ;;  %v24_v1 = vld [vmem:[#allocation2 + $0x8] sm:$0xff]  ;;  %s115_s0 = smov [#allocation5]  }
   0xf   :  { %v26_v2 = vsel %vm25_vm0, %v23_v0, 0.0  ;;  %v33_v3 = vsel %vm25_vm0, %v24_v1, 0.0  ;;  %s55_s13 = sshll.u32 %s115_s0, 4  ;;  %vm44_vm1 = vcmask 1041409   ;;  %vm47_vm2 = vcmask 254976   ;;  %s56_s13 = int_to_ptr.vmem [resolvable:$true] %s55_s13 }
  0x10   :  { %v27_v4 = vrot.slane %v26_v2, 4  ;;  %v34_v5 = vrot.slane %v33_v3, 4  ;;  %s88_s14 = scalar_lea.vmem %s56_s13, 32  ;;  %p93_p6 = scmp.lt.s32.totalorder %s56_s13, %s56_s13 }
  0x11   :  { %p89_p5 = scmp.ne.s32.totalorder %s56_s13, %s88_s14  ;;  %p94_p7 = scmp.lt.s32.totalorder %s88_s14, %s88_s14 }
  0x12   :  { %v28_v6 = vadd.f32 %v27_v4, %v26_v2  ;;  %v35_v7 = vadd.f32 %v34_v5, %v33_v3 }
  0x13   :  { %p95_p8 = por %p94_p7, %p93_p6 }
  0x14   :  { %v29_v8 = vrot.slane %v28_v6, 2  ;;  %v36_v9 = vrot.slane %v35_v7, 2 }
  0x15   :  { %p96_p9 = pnand %p95_p8, %p89_p5 }
  0x16   :  { %v30_v10 = vadd.f32 %v29_v8, %v28_v6  ;;  %v37_v11 = vadd.f32 %v36_v9, %v35_v7 }
  0x18   :  { %v31_v12 = vrot.slane %v30_v10, 1  ;;  %v38_v13 = vrot.slane %v37_v11, 1 }
  0x1a   :  { %v32_v14 = vadd.f32 %v31_v12, %v30_v10  ;;  %v39_v15 = vadd.f32 %v38_v13, %v37_v11 }
  0x1c   :  { %v40_v16 = vmul.f32 0.125, %v32_v14  ;;  %v41_v17 = vmul.f32 0.125, %v39_v15 }
  0x1e   :  { %v45_v18 = vsel %vm44_vm1, %v41_v17, %v40_v16 }
  0x1f   :  { %48 = vst.msk [vmem:[#allocation5] sm:$0x3] %vm47_vm2, %v45_v18 }
  0x20   :  { %99 = shalt.err (!%p96_p9)
}
  0x21   :  { %58 = dma.vmem_to_hbm [thread:$0]  %s56_s13, 32, %s133_s1, [#allocation4]  }
  0x22   :  { %110 = dma.done.wait [#allocation4], 32  }
  0x23   :  { %111 = vsyncadd [#allocation4], 4294967264 }
  0x24   :  { %62 = vsyncpa [#allocation3], 1 }
  0x25   :  { %63 = vsyncpa [#allocation4], 1 }

</bundles_post_ra>
